<compile_context>
chip_gen: v6e
topology: v6e:2x2x1
jax: 0.10.0
libtpu: 0.0.40
codegen_flags: <defaults>
</compile_context>

<pallas_src>
import jax
import jax.numpy as jnp
from jax.experimental import pallas as pl
from jax.experimental.pallas import tpu as pltpu


def _tanh_kernel(x_ref, o_ref):
    # Elementwise tanh on the current VMEM tile. Compute in f32 (EUP), cast
    # back to the output dtype. For f32 inputs the casts are no-ops.
    x = x_ref[...]
    o_ref[...] = jnp.tanh(x.astype(jnp.float32)).astype(o_ref.dtype)


def _round_up(n, m):
    return ((n + m - 1) // m) * m


def tanh_pallas(x, *, lanes=512, target_block_bytes=2 * 1024 * 1024):
    """Forward pass of Tanh: returns tanh(x), same shape and dtype as x."""
    orig_shape = x.shape
    orig_dtype = x.dtype
    itemsize = jnp.dtype(orig_dtype).itemsize

    # Sublane packing: 8 rows for 32-bit, 16 for 16-bit, 32 for 8-bit dtypes.
    sublane_mult = max(8, 32 // itemsize)

    n = int(x.size)
    flat = x.reshape(-1)

    # Re-tile into a lane-dense (rows, lanes) slab; lanes is a multiple of 128.
    rows = max(1, -(-n // lanes))  # cdiv

    # Rows per block sized so block_bytes ~= target_block_bytes (and a multiple
    # of the sublane packing). With lanes=512, f32 -> 1024 rows (2 MiB block),
    # bf16 -> 2048 rows (2 MiB block). 4x block fits all scoped-VMEM defaults.
    target_rows = max(
        sublane_mult,
        (target_block_bytes // (lanes * itemsize)) // sublane_mult * sublane_mult,
    )
    if rows <= target_rows:
        tile_rows = _round_up(rows, sublane_mult)
        rows_padded = tile_rows
    else:
        tile_rows = target_rows
        rows_padded = _round_up(rows, tile_rows)

    n_padded = rows_padded * lanes
    if n_padded != n:
        flat = jnp.pad(flat, (0, n_padded - n))
    x2d = flat.reshape(rows_padded, lanes)

    grid = (rows_padded // tile_rows,)
    block = (tile_rows, lanes)

    out2d = pl.pallas_call(
        _tanh_kernel,
        out_shape=jax.ShapeDtypeStruct((rows_padded, lanes), orig_dtype),
        grid_spec=pltpu.PrefetchScalarGridSpec(
            num_scalar_prefetch=0,
            grid=grid,
            in_specs=[pl.BlockSpec(block, lambda i: (i, 0))],
            out_specs=pl.BlockSpec(block, lambda i: (i, 0)),
        ),
        compiler_params=pltpu.CompilerParams(
            dimension_semantics=("parallel",),
        ),
        cost_estimate=pl.CostEstimate(
            flops=0,
            transcendentals=n_padded,
            bytes_accessed=2 * n_padded * itemsize,
        ),
    )(x2d)

    out_flat = out2d.reshape(-1)
    if n_padded != n:
        out_flat = out_flat[:n]
    return out_flat.reshape(orig_shape)


if __name__ == "__main__":
    key = jax.random.PRNGKey(0)

    # Small input consistent with a generic activation layer: (seq=8, hidden=32)
    x = jax.random.normal(key, (8, 32), dtype=jnp.float32)
    y = tanh_pallas(x)
    jax.block_until_ready(y)
    ref = jnp.tanh(x)
    assert y.shape == x.shape and y.dtype == x.dtype
    assert jnp.allclose(y, ref, atol=1e-6, rtol=1e-6)

    # Odd-sized input to exercise the padding / re-tiling path.
    k2, k3 = jax.random.split(key)
    x2 = jax.random.normal(k2, (2, 3, 50), dtype=jnp.float32)
    y2 = tanh_pallas(x2)
    jax.block_until_ready(y2)
    assert y2.shape == x2.shape and y2.dtype == x2.dtype
    assert jnp.allclose(y2, jnp.tanh(x2), atol=1e-6, rtol=1e-6)

    # bf16 input exercises the in-kernel f32 upcast path.
    x3 = jax.random.normal(k3, (8, 32), dtype=jnp.bfloat16)
    y3 = tanh_pallas(x3)
    jax.block_until_ready(y3)
    ref3 = jnp.tanh(x3.astype(jnp.float32)).astype(jnp.bfloat16)
    assert y3.shape == x3.shape and y3.dtype == x3.dtype
    assert jnp.allclose(y3.astype(jnp.float32), ref3.astype(jnp.float32),
                        atol=1e-2, rtol=1e-2)

    print("KERNEL_OK")
</pallas_src>

<mosaic_0001>
module attributes {stable_mosaic.version = 11 : i64} {
  func.func @_tanh_kernel(%arg0: i32, %arg1: memref<8x512xf32, #tpu.memory_space<vmem>>, %arg2: memref<8x512xf32, #tpu.memory_space<vmem>>) attributes {dimension_semantics = [#tpu.dimension_semantics<parallel>], iteration_bounds = array<i64: 1>, scalar_prefetch = 0 : i64, scratch_operands = 0 : i64, tpu.core_type = #tpu.core_type<tc>, window_params = [{transform_indices = @transform_0, window_bounds = array<i64: 8, 512>}, {transform_indices = @transform_1, window_bounds = array<i64: 8, 512>}]} {
    %c0 = arith.constant 0 : index
    %c0_0 = arith.constant 0 : index
    %0 = vector.load %arg1[%c0, %c0_0] : memref<8x512xf32, #tpu.memory_space<vmem>>, vector<8x512xf32>
    %1 = math.tanh %0 : vector<8x512xf32>
    %c0_1 = arith.constant 0 : index
    %c0_2 = arith.constant 0 : index
    %2 = vector.load %arg2[%c0_1, %c0_2] : memref<8x512xf32, #tpu.memory_space<vmem>>, vector<8x512xf32>
    tpu.vector_store %arg2[%c0_1, %c0_2], %1 {strides = array<i32>} : memref<8x512xf32, #tpu.memory_space<vmem>>, vector<8x512xf32>,
    return
  }
  func.func @transform_0(%arg0: i32) -> (i32, i32) {
    %c0_i32 = arith.constant 0 : i32
    %c0_i32_0 = arith.constant 0 : i32
    return %arg0, %c0_i32 : i32, i32
  }
  func.func @transform_1(%arg0: i32) -> (i32, i32) {
    %c0_i32 = arith.constant 0 : i32
    %c0_i32_0 = arith.constant 0 : i32
    return %arg0, %c0_i32 : i32, i32
  }
}

</mosaic_0001>

<bundles_post_ra>
// kernel: tpu_custom_call.1
= control target key start
LH: loop header
LB: loop body
LE: loop exit
PB: predicated region body
PF: predicated region fallthrough
CT: control target
= control target key end

     0   :  { %6 = vsyncpa [#allocation3], 0  ;;  %s120_s0 = inlined_call_operand.hbm [shape: f32[8,512], index: 0, kind: input, shape index: {}]   ;;  %s121_s1 = inlined_call_operand.hbm [shape: f32[8,512], index: 1, kind: output, shape index: {}]  }
   0x1   :  { %7 = vsyncpa [#allocation4], 0  ;;  %s102_s6 = smov [#allocation2]  }
   0x2   :  { %s14_s7 = sshll.u32 %s102_s6, 4  ;;  %s15_s7 = int_to_ptr.vmem [resolvable:$true] %s14_s7 }
   0x3   :  { %s66_s8 = scalar_lea.vmem %s15_s7, 512  ;;  %p71_p1 = scmp.lt.s32.totalorder %s15_s7, %s15_s7 }
   0x4   :  { %p67_p0 = scmp.ne.s32.totalorder %s15_s7, %s66_s8  ;;  %p72_p2 = scmp.lt.s32.totalorder %s66_s8, %s66_s8 }
   0x6   :  { %p73_p3 = por %p72_p2, %p71_p1 }
   0x8   :  { %p74_p4 = pnand %p73_p3, %p67_p0 }
   0xa   :  { %77 = shalt.err (!%p74_p4)
}
   0xb   :  { %17 = dma.hbm_to_vmem [thread:$0]  %s120_s0, 512, %s15_s7, [#allocation3]  }
   0xc   :  { %98 = dma.done.wait [#allocation3], 512  }
   0xd   :  { %99 = vsyncadd [#allocation3], 4294966784  ;;  %v21_v0 = vld [vmem:[#allocation2] sm:$0xff]  ;;  %v22_v1 = vld [vmem:[#allocation2 + $0x8] sm:$0xff]  ;;  %s103_s11 = smov [#allocation5]  }
   0xe   :  { %v23_v2 = vld [vmem:[#allocation2 + $0x10] sm:$0xff]  ;;  %50 = vtanh.f32 %v21_v0  ;;  %v24_v3 = vld [vmem:[#allocation2 + $0x18] sm:$0xff]  ;;  %s39_s12 = sshll.u32 %s103_s11, 4  ;;  %s40_s12 = int_to_ptr.vmem [resolvable:$true] %s39_s12 }
   0xf   :  { %52 = vtanh.f32 %v22_v1  ;;  %s78_s0 = scalar_lea.vmem %s40_s12, 512  ;;  %p83_p6 = scmp.lt.s32.totalorder %s40_s12, %s40_s12 }
  0x10   :  { %54 = vtanh.f32 %v23_v2  ;;  %p79_p5 = scmp.ne.s32.totalorder %s40_s12, %s78_s0  ;;  %p84_p7 = scmp.lt.s32.totalorder %s78_s0, %s78_s0 }
  0x11   :  { %56 = vtanh.f32 %v24_v3 }
  0x12   :  { %p85_p8 = por %p84_p7, %p83_p6 }
  0x14   :  { %p86_p9 = pnand %p85_p8, %p79_p5 }
  0x1b   :  { %v51_v4 = vpop.eup %50 }
  0x1c   :  { %v53_v5 = vpop.eup %52  ;;  %29 = vst [vmem:[#allocation5] sm:$0xff] %v51_v4 }
  0x1d   :  { %v55_v6 = vpop.eup %54  ;;  %30 = vst [vmem:[#allocation5 + $0x8] sm:$0xff] %v53_v5 }
  0x1e   :  { %v57_v7 = vpop.eup %56  ;;  %31 = vst [vmem:[#allocation5 + $0x10] sm:$0xff] %v55_v6 }
  0x1f   :  { %32 = vst [vmem:[#allocation5 + $0x18] sm:$0xff] %v57_v7 }
  0x20   :  { %89 = shalt.err (!%p86_p9)
}
  0x21   :  { %42 = dma.vmem_to_hbm [thread:$0]  %s40_s12, 512, %s121_s1, [#allocation4]  }
  0x22   :  { %100 = dma.done.wait [#allocation4], 512  }
  0x23   :  { %101 = vsyncadd [#allocation4], 4294966784 }
  0x24   :  { %46 = vsyncpa [#allocation3], 1 }
  0x25   :  { %47 = vsyncpa [#allocation4], 1 }

</bundles_post_ra>
